<compile_context>
chip_gen: v7x
topology: tpu7x:2x2x1
jax: 0.10.0
libtpu: 0.0.40
codegen_flags: <defaults>
</compile_context>

<pallas_src>
import functools

import jax
import jax.numpy as jnp
from jax.experimental import pallas as pl
from jax.experimental.pallas import tpu as pltpu


def _round_up(x, m):
    return ((x + m - 1) // m) * m


def _mlp_kernel(num_layers, x_ref, w_ref, b_ref, o_ref):
    """Fused MLP: (x @ W_i + b_i) -> relu, last layer without relu.

    x_ref: (TILE_B, D_PAD) f32        -- one batch tile
    w_ref: (L, D_PAD, D_PAD) bf16/f32 -- VMEM-resident packed weights
    b_ref: (L, 1, D_PAD) f32          -- VMEM-resident packed biases
    o_ref: (TILE_B, D_PAD) f32        -- lane-dense output tile
    """
    # Activations live in f32 vregs; weights go to the MXU in their stored
    # (typically bf16) dtype with f32 accumulation.
    h = x_ref[...].astype(jnp.float32)
    for i in range(num_layers):              # static unroll (3 layers)
        w = w_ref[i]                         # (D_PAD, D_PAD)
        b = b_ref[i]                         # (1, D_PAD)
        h = jnp.dot(h.astype(w.dtype), w, preferred_element_type=jnp.float32) + b
        if i < num_layers - 1:
            h = jnp.maximum(h, 0.0)          # F.relu
    o_ref[...] = h.astype(o_ref.dtype)       # full-lane, unmasked stores


def pack_params(weights, biases, compute_dtype=jnp.bfloat16):
    """Zero-pad every layer to a common 128-aligned width and stack.

    weights[i]: [d_in, d_out] (transposed vs. PyTorch nn.Linear [out, in])
    biases[i]:  [d_out]
    Done once at init time, not per forward call.
    """
    num_layers = len(weights)
    out_dim = weights[-1].shape[1]
    dims = [weights[0].shape[0]] + [w.shape[1] for w in weights]
    d_pad = _round_up(max(max(dims), 128), 128)

    w_packed = jnp.zeros((num_layers, d_pad, d_pad), compute_dtype)
    b_packed = jnp.zeros((num_layers, 1, d_pad), jnp.float32)
    for i, (w, b) in enumerate(zip(weights, biases)):
        w_packed = w_packed.at[i, : w.shape[0], : w.shape[1]].set(
            w.astype(compute_dtype))
        b_packed = b_packed.at[i, 0, : b.shape[0]].set(b.astype(jnp.float32))
    return w_packed, b_packed, out_dim


def box_predictor_forward(x, w_packed, b_packed, out_dim, *, tile_b=512):
    """Runs the fused MLP Pallas kernel.

    x: [B, d_in] float array; returns [B, out_dim] float32.
    """
    num_layers, d_pad, _ = w_packed.shape
    B, d_in = x.shape

    # Batch tile: multiple of 8 sublanes, no larger than the (padded) batch.
    tile_b = _round_up(min(tile_b, _round_up(B, 8)), 8)
    b_rows = _round_up(B, tile_b)
    grid = (b_rows // tile_b,)

    # Pad batch rows and feature lanes with zeros (zeros contribute nothing).
    x_p = jnp.zeros((b_rows, d_pad), jnp.float32).at[:B, :d_in].set(
        x.astype(jnp.float32))

    flops = 2 * b_rows * num_layers * d_pad * d_pad
    bytes_accessed = (
        x_p.size * 4
        + w_packed.size * w_packed.dtype.itemsize
        + b_packed.size * 4
        + b_rows * d_pad * 4
    )

    out_padded = pl.pallas_call(
        functools.partial(_mlp_kernel, num_layers),
        out_shape=jax.ShapeDtypeStruct((b_rows, d_pad), jnp.float32),
        grid=grid,
        in_specs=[
            # Batch tile of activations, pipelined over the grid.
            pl.BlockSpec((tile_b, d_pad), lambda i: (i, 0)),
            # Packed weights / biases: constant block index -> VMEM-resident.
            pl.BlockSpec((num_layers, d_pad, d_pad), lambda i: (0, 0, 0)),
            pl.BlockSpec((num_layers, 1, d_pad), lambda i: (0, 0, 0)),
        ],
        out_specs=pl.BlockSpec((tile_b, d_pad), lambda i: (i, 0)),
        compiler_params=pltpu.CompilerParams(
            dimension_semantics=("parallel",)),
        cost_estimate=pl.CostEstimate(
            flops=flops, transcendentals=0, bytes_accessed=bytes_accessed),
    )(x_p, w_packed, b_packed)

    return out_padded[:B, :out_dim]


def init_params(key, input_dim, hidden_dim, output_dim, num_layers):
    """Deterministic synthetic parameters matching nn.Linear shapes.

    PyTorch stores W as [out, in]; we store the transpose [in, out]."""
    hidden = [hidden_dim] * (num_layers - 1)
    in_dims = [input_dim] + hidden
    out_dims = hidden + [output_dim]
    weights, biases = [], []
    for n, k in zip(in_dims, out_dims):
        key, kw, kb = jax.random.split(key, 3)
        bound = 1.0 / (n ** 0.5)  # same scale as PyTorch default init
        weights.append(jax.random.uniform(kw, (n, k), jnp.float32, -bound, bound))
        biases.append(jax.random.uniform(kb, (k,), jnp.float32, -bound, bound))
    return weights, biases


if __name__ == "__main__":
    # Real TransVG head shapes: BoxPredictor(vl_hidden_dim=256, 256, 4, 3);
    # small batch, tile_b=8 so the grid actually has >1 step.
    batch = 16
    input_dim = 256
    hidden_dim = 256
    output_dim = 4
    num_layers = 3

    key = jax.random.PRNGKey(0)
    key, kx = jax.random.split(key)
    x = jax.random.normal(kx, (batch, input_dim), jnp.float32)
    weights, biases = init_params(key, input_dim, hidden_dim, output_dim, num_layers)

    w_packed, b_packed, out_dim = pack_params(weights, biases,
                                              compute_dtype=jnp.bfloat16)

    out = box_predictor_forward(x, w_packed, b_packed, out_dim, tile_b=8)
    out = jax.block_until_ready(out)

    # Matched-dtype reference (same bf16-weight / f32-accumulate policy).
    ref = x.astype(jnp.float32)
    for i, (w, b) in enumerate(zip(weights, biases)):
        ref = jnp.dot(ref.astype(jnp.bfloat16), w.astype(jnp.bfloat16),
                      preferred_element_type=jnp.float32) + b[None, :]
        if i < num_layers - 1:
            ref = jnp.maximum(ref, 0.0)

    # Full-f32 reference (exact PyTorch semantics), loose tolerance vs bf16 weights.
    ref_f32 = x
    for i, (w, b) in enumerate(zip(weights, biases)):
        ref_f32 = ref_f32 @ w + b[None, :]
        if i < num_layers - 1:
            ref_f32 = jnp.maximum(ref_f32, 0.0)

    assert out.shape == (batch, output_dim)
    assert jnp.allclose(out, ref, atol=5e-3, rtol=5e-3), float(jnp.max(jnp.abs(out - ref)))
    assert jnp.allclose(out, ref_f32, atol=5e-2, rtol=5e-2), float(jnp.max(jnp.abs(out - ref_f32)))

    print("KERNEL_OK")
</pallas_src>

<mosaic_0001>
module attributes {stable_mosaic.version = 11 : i64} {
  func.func @_mlp_kernel(%arg0: i32, %arg1: memref<8x256xf32, #tpu.memory_space<vmem>>, %arg2: memref<3x256x256xbf16, #tpu.memory_space<vmem>>, %arg3: memref<3x1x256xf32, #tpu.memory_space<vmem>>, %arg4: memref<8x256xf32, #tpu.memory_space<vmem>>) attributes {dimension_semantics = [#tpu.dimension_semantics<parallel>], iteration_bounds = array<i64: 2>, scalar_prefetch = 0 : i64, scratch_operands = 0 : i64, tpu.core_type = #tpu.core_type<tc>, window_params = [{transform_indices = @transform_0, window_bounds = array<i64: 8, 256>}, {pipeline_mode = #tpu.pipeline_mode<synchronous>, transform_indices = @transform_1, window_bounds = array<i64: 3, 256, 256>}, {pipeline_mode = #tpu.pipeline_mode<synchronous>, transform_indices = @transform_2, window_bounds = array<i64: 3, 1, 256>}, {transform_indices = @transform_3, window_bounds = array<i64: 8, 256>}]} {
    %c0 = arith.constant 0 : index
    %c0_0 = arith.constant 0 : index
    %0 = vector.load %arg1[%c0, %c0_0] : memref<8x256xf32, #tpu.memory_space<vmem>>, vector<8x256xf32>
    %c0_1 = arith.constant 0 : index
    %c0_2 = arith.constant 0 : index
    %c0_3 = arith.constant 0 : index
    %1 = vector.load %arg2[%c0_1, %c0_2, %c0_3] : memref<3x256x256xbf16, #tpu.memory_space<vmem>>, vector<1x256x256xbf16>
    %2 = vector.shape_cast %1 : vector<1x256x256xbf16> to vector<256x256xbf16>
    %c0_4 = arith.constant 0 : index
    %c0_5 = arith.constant 0 : index
    %c0_6 = arith.constant 0 : index
    %3 = vector.load %arg3[%c0_4, %c0_5, %c0_6] : memref<3x1x256xf32, #tpu.memory_space<vmem>>, vector<1x1x256xf32>
    %4 = vector.shape_cast %3 : vector<1x1x256xf32> to vector<1x256xf32>
    %5 = arith.truncf %0 : vector<8x256xf32> to vector<8x256xbf16>
    %cst = arith.constant dense<0.000000e+00> : vector<8x256xf32>
    %6 = tpu.matmul %5, %2, %cst {dimension_numbers = #tpu.dot_dimension_numbers<[1], [0], [0], [1], [0, 0, 1, 1], [], []>} : vector<8x256xbf16>, vector<256x256xbf16>, vector<8x256xf32> -> vector<8x256xf32>
    %7 = vector.broadcast %4 : vector<1x256xf32> to vector<8x256xf32>
    %8 = arith.addf %6, %7 : vector<8x256xf32>
    %cst_7 = arith.constant 0.000000e+00 : f32
    %9 = vector.broadcast %cst_7 : f32 to vector<8x256xf32>
    %10 = arith.maximumf %8, %9 : vector<8x256xf32>
    %c1 = arith.constant 1 : index
    %c0_8 = arith.constant 0 : index
    %c0_9 = arith.constant 0 : index
    %11 = vector.load %arg2[%c1, %c0_8, %c0_9] : memref<3x256x256xbf16, #tpu.memory_space<vmem>>, vector<1x256x256xbf16>
    %12 = vector.shape_cast %11 : vector<1x256x256xbf16> to vector<256x256xbf16>
    %c1_10 = arith.constant 1 : index
    %c0_11 = arith.constant 0 : index
    %c0_12 = arith.constant 0 : index
    %13 = vector.load %arg3[%c1_10, %c0_11, %c0_12] : memref<3x1x256xf32, #tpu.memory_space<vmem>>, vector<1x1x256xf32>
    %14 = vector.shape_cast %13 : vector<1x1x256xf32> to vector<1x256xf32>
    %15 = arith.truncf %10 : vector<8x256xf32> to vector<8x256xbf16>
    %cst_13 = arith.constant dense<0.000000e+00> : vector<8x256xf32>
    %16 = tpu.matmul %15, %12, %cst_13 {dimension_numbers = #tpu.dot_dimension_numbers<[1], [0], [0], [1], [0, 0, 1, 1], [], []>} : vector<8x256xbf16>, vector<256x256xbf16>, vector<8x256xf32> -> vector<8x256xf32>
    %17 = vector.broadcast %14 : vector<1x256xf32> to vector<8x256xf32>
    %18 = arith.addf %16, %17 : vector<8x256xf32>
    %cst_14 = arith.constant 0.000000e+00 : f32
    %19 = vector.broadcast %cst_14 : f32 to vector<8x256xf32>
    %20 = arith.maximumf %18, %19 : vector<8x256xf32>
    %c2 = arith.constant 2 : index
    %c0_15 = arith.constant 0 : index
    %c0_16 = arith.constant 0 : index
    %21 = vector.load %arg2[%c2, %c0_15, %c0_16] : memref<3x256x256xbf16, #tpu.memory_space<vmem>>, vector<1x256x256xbf16>
    %22 = vector.shape_cast %21 : vector<1x256x256xbf16> to vector<256x256xbf16>
    %c2_17 = arith.constant 2 : index
    %c0_18 = arith.constant 0 : index
    %c0_19 = arith.constant 0 : index
    %23 = vector.load %arg3[%c2_17, %c0_18, %c0_19] : memref<3x1x256xf32, #tpu.memory_space<vmem>>, vector<1x1x256xf32>
    %24 = vector.shape_cast %23 : vector<1x1x256xf32> to vector<1x256xf32>
    %25 = arith.truncf %20 : vector<8x256xf32> to vector<8x256xbf16>
    %cst_20 = arith.constant dense<0.000000e+00> : vector<8x256xf32>
    %26 = tpu.matmul %25, %22, %cst_20 {dimension_numbers = #tpu.dot_dimension_numbers<[1], [0], [0], [1], [0, 0, 1, 1], [], []>} : vector<8x256xbf16>, vector<256x256xbf16>, vector<8x256xf32> -> vector<8x256xf32>
    %27 = vector.broadcast %24 : vector<1x256xf32> to vector<8x256xf32>
    %28 = arith.addf %26, %27 : vector<8x256xf32>
    %c0_21 = arith.constant 0 : index
    %c0_22 = arith.constant 0 : index
    %29 = vector.load %arg4[%c0_21, %c0_22] : memref<8x256xf32, #tpu.memory_space<vmem>>, vector<8x256xf32>
    tpu.vector_store %arg4[%c0_21, %c0_22], %28 {strides = array<i32>} : memref<8x256xf32, #tpu.memory_space<vmem>>, vector<8x256xf32>,
    return
  }
  func.func @transform_0(%arg0: i32) -> (i32, i32) {
    %c0_i32 = arith.constant 0 : i32
    %c0_i32_0 = arith.constant 0 : i32
    return %arg0, %c0_i32 : i32, i32
  }
  func.func @transform_1(%arg0: i32) -> (i32, i32, i32) {
    %c0_i32 = arith.constant 0 : i32
    %c0_i32_0 = arith.constant 0 : i32
    %c0_i32_1 = arith.constant 0 : i32
    %c0_i32_2 = arith.constant 0 : i32
    return %c0_i32, %c0_i32_0, %c0_i32_1 : i32, i32, i32
  }
  func.func @transform_2(%arg0: i32) -> (i32, i32, i32) {
    %c0_i32 = arith.constant 0 : i32
    %c0_i32_0 = arith.constant 0 : i32
    %c0_i32_1 = arith.constant 0 : i32
    %c0_i32_2 = arith.constant 0 : i32
    return %c0_i32, %c0_i32_0, %c0_i32_1 : i32, i32, i32
  }
  func.func @transform_3(%arg0: i32) -> (i32, i32) {
    %c0_i32 = arith.constant 0 : i32
    %c0_i32_0 = arith.constant 0 : i32
    return %arg0, %c0_i32 : i32, i32
  }
}

</mosaic_0001>

<bundles_post_ra>
// kernel: tpu_custom_call.1
= control target key start
LH: loop header
LB: loop body
LE: loop exit
PB: predicated region body
PF: predicated region fallthrough
CT: control target
= control target key end

     0   :  { %8 = vsyncpa [#allocation3], 0  ;;  %s1737_s0 = inlined_call_operand.hbm [shape: f32[16,256], index: 0, kind: input, shape index: {}]   ;;  %s1738_s1 = inlined_call_operand.hbm [shape: bf16[3,256,256], index: 1, kind: input, shape index: {}]   ;;  %s1739_s2 = inlined_call_operand.vmem [shape: f32[3,1,256], index: 2, kind: input, shape index: {}]   ;;  %s1740_s3 = inlined_call_operand.hbm [shape: f32[16,256], index: 3, kind: output, shape index: {}]  }
   0x1   :  { %10 = vsyncpa [#allocation3 + $0x1], 0 }
   0x2   :  { %11 = vsyncpa [#allocation6], 0 }
   0x3   :  { %12 = vsyncpa [#allocation4], 0 }
   0x4   :  { %14 = vsyncpa [#allocation4 + $0x1], 0  ;;  %s1524_s12 = smov 0   ;;  %s1526_s13 = smov 0  }
   0x5   :  { %s1528_s14 = smov 0   ;;  %s1530_s15 = smov 0  }
   0x6 LB: > { %s1545_s16 = sadd.s32 4294967295, %s1497_s15   ;;  %s1050_s17 = sadd.s32 4294967294, %s1497_s15   ;;  %s1497_s15 = sphi %s1530_s15, %s1760_s15   ;;  %s1493_s14 = sphi %s1528_s14, %s1759_s14   ;;  %s1489_s13 = sphi %s1526_s13, %s1758_s13   ;;  %s1485_s12 = sphi %s1524_s12, %s1757_s12  }
   0x7   : > { %p40_p0 = scmp.ne.s32.totalorder %s1489_s13, %s1485_s12  ;;  %p1741_p1 = scmp.eq.s32.totalorder %s1545_s16, 0 }
   0x8   : > { %p112_p3 = scmp.eq.s32.totalorder %s1050_s17, 1  ;;  %p1051_p5 = scmp.ge.s32.totalorder %s1497_s15, 1 }
   0x9   : > { %p1554_p4 = por %p1741_p1, %p40_p0  ;;  %p119_p7 = scmp.lt.s32.totalorder %s1497_s15, 3 }
   0xa   : > { %p1559_p6 = por %p112_p3, %p40_p0  ;;  %s1499_s21 = smov [#allocation5]  }
   0xb   : > { %s1744_s18 = scalar_select %p1554_p4, 1, 0 }
   0xc   : > { %s1745_s19 = scalar_select %p1559_p6, 1, 0 }
   0xd   : > { %p1564_p8 = pnand %p1051_p5, %p119_p7  ;;  %s131_s22 = sshll.u32 %s1499_s21, 4  ;;  %s1568_s22 = int_to_ptr.vmem [resolvable:$true] %s131_s22 }
   0xe   : > { %s1580_s24 = sadd.s32 1, %s1497_s15   ;;  %s27_s25 = sadd.s32 1, %s1493_s14 }
   0xf   : > { %s1746_s20 = scalar_select %p1564_p8, 1, 0 }
  0x10   : > { %p1174_p9 = pneg %p1564_p8  ;;  %s24_s26 = ssub.s32 %s1497_s15, %s1580_s24 }
  0x11   : > { %s1369_s29 = scalar_lea.hbm %s1738_s1, 12288 }
  0x12   : > { %p1575_p11 = pnand %p1174_p9, %p1741_p1  ;;  %p1370_p12 = scmp.ne.s32.totalorder %s1738_s1, %s1369_s29 }
  0x13   : > { %p1376_p5 = scmp.lt.u32.totalorder %s1369_s29, %s1738_s1 }
  0x14   : > { %p1371_p13 = pneg %p1575_p11 }
  0x16   : > { %p1372_p0 = pnand %p1371_p13, %p1370_p12 }
  0x18   : > { %p1373_p3 = pneg %p1372_p0 }
  0x1a   : > { %p1378_p7 = pnand %p1376_p5, %p1373_p3 }
  0x1c   : > { %1381 = shalt.err (!%p1378_p7)
}
  0x1d   : > { %s1382_s7 = scalar_lea.vmem %s1568_s22, 12288  ;;  %p1390_p2 = scmp.lt.s32.totalorder %s1568_s22, %s1568_s22 }
  0x1e   : > { %p1383_p9 = scmp.ne.s32.totalorder %s1568_s22, %s1382_s7  ;;  %p1391_p6 = scmp.lt.s32.totalorder %s1382_s7, %s1382_s7 }
  0x20   : > { %p1385_p10 = pnand %p1383_p9, %p1371_p13  ;;  %p1392_p4 = por %p1391_p6, %p1390_p2 }
  0x22   : > { %p1386_p1 = pneg %p1385_p10 }
  0x24   : > { %p1393_p8 = pnand %p1392_p4, %p1386_p1 }
  0x26   : > { %1396 = shalt.err (!%p1393_p8)
}
  0x27   : > { %s1500_s8 = smov 128   ;;  %s1501_s9 = smov 8  }
  0x28   : > { %1177 = dma.hbm_to_vmem [thread:$0]  (!%p1575_p11), %s1738_s1, 12288, %s1568_s22, [#allocation6], %s1500_s8, %s1500_s8, %s1501_s9  }
  0x29   : > { %p25_p2 = scmp.eq.s32.totalorder %s24_s26, 0  ;;  %p34_p1 = scmp.ne.s32.totalorder %s1493_s14, %s1489_s13 }
  0x2a   : > { %p35_p4 = scmp.eq.s32.totalorder %s1497_s15, 0  ;;  %p1187_p6 = scmp.lt.s32.totalorder %s1497_s15, 2 }
  0x2b   : > { %s1611_s17 = scalar_select %p25_p2, %s1493_s14, %s27_s25  }
  0x2c   : > { %p36_p8 = por %p35_p4, %p34_p1  ;;  %p1748_p10 = scmp.eq.s32.totalorder %s1545_s16, 1 }
  0x2d   : > { %s148_s27 = sand.u32 1, %s1493_s14   ;;  %s1164_s28 = sshll.u32 %s1497_s15, 8 }
  0x2e   : > { %p1615_p12 = por %p1748_p10, %p34_p1  ;;  %s1054_s29 = sshll.u32 %s148_s27, 4 }
  0x2f   : > { %s1624_s4 = scalar_lea.hbm %s1737_s0, %s1164_s28  ;;  %s152_s22 = scalar_lea.vmem [#allocation2], %s1054_s29 }
  0x30   : > { %s160_s25 = sshll.u32 %s152_s22, 4  ;;  %p1626_p11 = pnand %p1187_p6, %p36_p8  ;;  %s1630_s25 = int_to_ptr.vmem [resolvable:$true] %s160_s25 }
  0x31   : > { %s149_s5 = scalar_lea.sflag [#allocation3], %s148_s27  ;;  %s1397_s6 = scalar_lea.hbm %s1624_s4, 256 }
  0x32   : > { %p1398_p13 = scmp.ne.s32.totalorder %s1624_s4, %s1397_s6  ;;  %p1399_p0 = pneg %p1626_p11 }
  0x33   : > { %s1402_s9 = scalar_lea.hbm %s1737_s0, 512  ;;  %p1403_p7 = scmp.lt.u32.totalorder %s1624_s4, %s1737_s0 }
  0x34   : > { %p1400_p3 = pnand %p1399_p0, %p1398_p13  ;;  %p1404_p9 = scmp.lt.u32.totalorder %s1402_s9, %s1397_s6 }
  0x35   : > { %p1406_p1 = scmp.lt.u32.totalorder %s1397_s6, %s1624_s4 }
  0x36   : > { %p1401_p5 = pneg %p1400_p3  ;;  %p1405_p2 = por %p1404_p9, %p1403_p7 }
  0x38   : > { %p1407_p4 = por %p1406_p1, %p1405_p2 }
  0x3a   : > { %p1408_p6 = pnand %p1407_p4, %p1401_p5 }
  0x3c   : > { %1411 = shalt.err (!%p1408_p6)
}
  0x3d   : > { %s1412_s27 = scalar_lea.vmem %s1630_s25, 256  ;;  %s1502_s28 = smov [#allocation2]  }
  0x3e   : > { %p1413_p8 = scmp.ne.s32.totalorder %s1630_s25, %s1412_s27  ;;  %s1417_s29 = sshll.u32 %s1502_s28, 4  ;;  %s1418_s29 = int_to_ptr.vmem [resolvable:$false] %s1417_s29 }
  0x3f   : > { %s1419_s23 = scalar_lea.vmem %s1418_s29, 512  ;;  %p1420_p3 = scmp.lt.s32.totalorder %s1630_s25, %s1418_s29 }
  0x40   : > { %p1415_p10 = pnand %p1413_p8, %p1399_p0  ;;  %p1421_p7 = scmp.lt.s32.totalorder %s1419_s23, %s1412_s27 }
  0x42   : > { %p1416_p13 = pneg %p1415_p10  ;;  %p1422_p9 = por %p1421_p7, %p1420_p3 }
  0x44   : > { %p1423_p2 = pnand %p1422_p9, %p1416_p13 }
  0x46   : > { %1426 = shalt.err (!%p1423_p2)
}
  0x47   : > { %1181 = dma.hbm_to_vmem [thread:$0]  (!%p1626_p11), %s1624_s4, 256, %s1630_s25, %s149_s5  }
  0x48   : > { %p1751_p5 = scmp.ne.s32.totalorder %s1746_s20, 0 }
  0x49   : > { %s1660_s30 = sand.u32 (!%p1751_p5), 1, %s1489_s13   ;;  %p1752_p0 = scmp.ne.s32.totalorder (!%p1751_p5), %s1744_s18, 0 }
  0x4a   : > { %169 = sbr.rel (%p1751_p5) target bundleno = 819 (0x333), region = 32  ;;  %s1058_s22 = sshll.u32 (!%p1751_p5), %s1660_s30, 4 }
  0x4b   : > { %s172_s6 = scalar_lea.sflag (!%p1751_p5), [#allocation3], %s1660_s30  ;;  %s1666_s7 = scalar_lea.vmem (!%p1751_p5), [#allocation2], %s1058_s22 }
  0x51   : > { %1472 = dma.done.wait (%p1752_p0), %s172_s6, 256  }
  0x52   : > { %1474 = vsyncadd (%p1752_p0), %s172_s6, 4294967040  ;;  %p1753_p11 = scmp.eq.s32.totalorder %s1545_s16, 0 }
  0x54   : > { %1476 = dma.done.wait (%p1753_p11), [#allocation6], 12288   ;;  %p1754_p1 = pmov %p1753_p11 }
  0x55   : > { %v1225_v0 = vld [vmem:[#allocation5 + $0x4] ss:$8 sps:$4 sm:$0xff]   ;;  %v1227_v1 = vld [vmem:[#allocation5] ss:$8 sps:$4 sm:$0xff]   ;;  %v1228_v2 = vld [vmem:[#allocation5 + $0x14] ss:$8 sps:$4 sm:$0xff]  }
  0x56   : > { %1478 = vsyncadd (%p1754_p1), [#allocation6], 4294955008  ;;  %410 = vmatprep.subr.bf16.mxu0 %v1225_v0  ;;  %v1230_v3 = vld [vmem:[#allocation5 + $0x10] ss:$8 sps:$4 sm:$0xff]   ;;  %v1231_v4 = vld [vmem:[#allocation5 + $0x24] ss:$8 sps:$4 sm:$0xff]  }
  0x57   : > { %411 = vmatpush1.bf16.msra.mxu0 %v1227_v1  ;;  %v1233_v5 = vld [vmem:[#allocation5 + $0x20] ss:$8 sps:$4 sm:$0xff]   ;;  %v1234_v6 = vld [vmem:[#allocation5 + $0x34] ss:$8 sps:$4 sm:$0xff]   ;;  %v1236_v7 = vld [vmem:[#allocation5 + $0x30] ss:$8 sps:$4 sm:$0xff]  }
  0x58   : > { %412 = vmatprep.subr.bf16.mxu0 %v1228_v2  ;;  %v1237_v8 = vld [vmem:[#allocation5 + $0x44] ss:$8 sps:$4 sm:$0xff]   ;;  %v1239_v9 = vld [vmem:[#allocation5 + $0x40] ss:$8 sps:$4 sm:$0xff]   ;;  %v1240_v10 = vld [vmem:[#allocation5 + $0x54] ss:$8 sps:$4 sm:$0xff]  }
  0x59   : > { %v1242_v11 = vld [vmem:[#allocation5 + $0x50] ss:$8 sps:$4 sm:$0xff]   ;;  %v1243_v12 = vld [vmem:[#allocation5 + $0x64] ss:$8 sps:$4 sm:$0xff]   ;;  %v1245_v13 = vld [vmem:[#allocation5 + $0x60] ss:$8 sps:$4 sm:$0xff]  }
  0x5a   : > { %v203_v14 = vld [vmem:[%s1666_s7 + $0x8] sm:$0xff]  ;;  %v202_v54 = vld [vmem:[%s1666_s7] sm:$0xff]  ;;  %s1165_s8 = sshll.u32 %s1545_s16, 8  ;;  %s201_s9 = scalar_lea.vmem [#allocation7], %s1058_s22 }
  0x5b   : > { %413 = vmatpush1.bf16.msra.mxu0 %v1230_v3  ;;  %v238_v15 = vpack.c.bf16 %v203_v14, %v203_v14  ;;  %v1273_v16 = vld [vmem:[#allocation5 + $0x104] ss:$8 sps:$4 sm:$0xff]   ;;  %v1275_v17 = vld [vmem:[#allocation5 + $0x100] ss:$8 sps:$4 sm:$0xff]   ;;  %v1246_v18 = vld [vmem:[#allocation5 + $0x74] ss:$8 sps:$4 sm:$0xff]   ;;  %v237_v56 = vpack.c.bf16 %v202_v54, %v202_v54  ;;  %s1693_s28 = scalar_lea.hbm %s1740_s3, %s1165_s8 }
  0x5c   : > { %414 = vmatprep.subr.bf16.mxu0 %v1231_v4  ;;  %v1276_v19 = vld [vmem:[#allocation5 + $0x114] ss:$8 sps:$4 sm:$0xff]   ;;  %v1248_v20 = vld [vmem:[#allocation5 + $0x70] ss:$8 sps:$4 sm:$0xff]   ;;  %661 = vmatprep.subr.bf16.mxu1 %v1273_v16  ;;  %v1279_v22 = vld [vmem:[#allocation5 + $0x124] ss:$8 sps:$4 sm:$0xff]  }
  0x5d   : > { %442 = vmatprep.mubr.bf16.mxu0 %v238_v15  ;;  %662 = vmatpush1.bf16.msra.mxu1 %v1275_v17  ;;  %v1278_v21 = vld [vmem:[#allocation5 + $0x110] ss:$8 sps:$4 sm:$0xff]   ;;  %v1249_v23 = vld [vmem:[#allocation5 + $0x84] ss:$8 sps:$4 sm:$0xff]   ;;  %v1251_v24 = vld [vmem:[#allocation5 + $0x80] ss:$8 sps:$4 sm:$0xff]  }
  0x5e   : > { %663 = vmatprep.subr.bf16.mxu1 %v1276_v19  ;;  %v1281_v25 = vld [vmem:[#allocation5 + $0x120] ss:$8 sps:$4 sm:$0xff]   ;;  %v1282_v26 = vld [vmem:[#allocation5 + $0x134] ss:$8 sps:$4 sm:$0xff]   ;;  %v1254_v28 = vld [vmem:[#allocation5 + $0x90] ss:$8 sps:$4 sm:$0xff]  }
  0x5f   : > { %415 = vmatpush1.bf16.msra.mxu0 %v1233_v5  ;;  %v1252_v27 = vld [vmem:[#allocation5 + $0x94] ss:$8 sps:$4 sm:$0xff]   ;;  %v1284_v29 = vld [vmem:[#allocation5 + $0x130] ss:$8 sps:$4 sm:$0xff]   ;;  %v1285_v30 = vld [vmem:[#allocation5 + $0x144] ss:$8 sps:$4 sm:$0xff]  }
  0x60   : > { %416 = vmatprep.subr.bf16.mxu0 %v1234_v6  ;;  %v1255_v31 = vld [vmem:[#allocation5 + $0xa4] ss:$8 sps:$4 sm:$0xff]   ;;  %v1257_v32 = vld [vmem:[#allocation5 + $0xa0] ss:$8 sps:$4 sm:$0xff]   ;;  %v1288_v34 = vld [vmem:[#allocation5 + $0x154] ss:$8 sps:$4 sm:$0xff]  }
  0x61   : > { %664 = vmatpush1.bf16.msra.mxu1 %v1278_v21  ;;  %v1287_v33 = vld [vmem:[#allocation5 + $0x140] ss:$8 sps:$4 sm:$0xff]   ;;  %v1258_v35 = vld [vmem:[#allocation5 + $0xb4] ss:$8 sps:$4 sm:$0xff]   ;;  %v1290_v36 = vld [vmem:[#allocation5 + $0x150] ss:$8 sps:$4 sm:$0xff]  }
  0x62   : > { %665 = vmatprep.subr.bf16.mxu1 %v1279_v22  ;;  %v1260_v37 = vld [vmem:[#allocation5 + $0xb0] ss:$8 sps:$4 sm:$0xff]   ;;  %v1291_v38 = vld [vmem:[#allocation5 + $0x164] ss:$8 sps:$4 sm:$0xff]   ;;  %v1293_v40 = vld [vmem:[#allocation5 + $0x160] ss:$8 sps:$4 sm:$0xff]  }
  0x63   : > { %417 = vmatpush1.bf16.msra.mxu0 %v1236_v7  ;;  %v1261_v39 = vld [vmem:[#allocation5 + $0xc4] ss:$8 sps:$4 sm:$0xff]   ;;  %v1263_v41 = vld [vmem:[#allocation5 + $0xc0] ss:$8 sps:$4 sm:$0xff]   ;;  %v1294_v42 = vld [vmem:[#allocation5 + $0x174] ss:$8 sps:$4 sm:$0xff]  }
  0x64   : > { %418 = vmatprep.subr.bf16.mxu0 %v1237_v8  ;;  %v1264_v43 = vld [vmem:[#allocation5 + $0xd4] ss:$8 sps:$4 sm:$0xff]   ;;  %v1296_v44 = vld [vmem:[#allocation5 + $0x170] ss:$8 sps:$4 sm:$0xff]   ;;  %v1297_v46 = vld [vmem:[#allocation5 + $0x184] ss:$8 sps:$4 sm:$0xff]  }
  0x65   : > { %666 = vmatpush1.bf16.msra.mxu1 %v1281_v25  ;;  %v1266_v45 = vld [vmem:[#allocation5 + $0xd0] ss:$8 sps:$4 sm:$0xff]   ;;  %v1267_v47 = vld [vmem:[#allocation5 + $0xe4] ss:$8 sps:$4 sm:$0xff]   ;;  %v1299_v48 = vld [vmem:[#allocation5 + $0x180] ss:$8 sps:$4 sm:$0xff]  }
  0x66   : > { %667 = vmatprep.subr.bf16.mxu1 %v1282_v26  ;;  %v1269_v49 = vld [vmem:[#allocation5 + $0xe0] ss:$8 sps:$4 sm:$0xff]   ;;  %v1300_v50 = vld [vmem:[#allocation5 + $0x194] ss:$8 sps:$4 sm:$0xff]   ;;  %v1302_v52 = vld [vmem:[#allocation5 + $0x190] ss:$8 sps:$4 sm:$0xff]  }
  0x67   : > { %419 = vmatpush1.bf16.msra.mxu0 %v1239_v9  ;;  %v1270_v51 = vld [vmem:[#allocation5 + $0xf4] ss:$8 sps:$4 sm:$0xff]   ;;  %v1272_v53 = vld [vmem:[#allocation5 + $0xf0] ss:$8 sps:$4 sm:$0xff]   ;;  %v1303_v55 = vld [vmem:[#allocation5 + $0x1a4] ss:$8 sps:$4 sm:$0xff]  }
  0x68   : > { %420 = vmatprep.subr.bf16.mxu0 %v1240_v10  ;;  %v1305_v57 = vld [vmem:[#allocation5 + $0x1a0] ss:$8 sps:$4 sm:$0xff]   ;;  %v1306_v58 = vld [vmem:[#allocation5 + $0x1b4] ss:$8 sps:$4 sm:$0xff]   ;;  %v1308_v59 = vld [vmem:[#allocation5 + $0x1b0] ss:$8 sps:$4 sm:$0xff]  }
  0x69   : > { %668 = vmatpush1.bf16.msra.mxu1 %v1284_v29  ;;  %v1309_v60 = vld [vmem:[#allocation5 + $0x1c4] ss:$8 sps:$4 sm:$0xff]   ;;  %v1311_v61 = vld [vmem:[#allocation5 + $0x1c0] ss:$8 sps:$4 sm:$0xff]   ;;  %v1312_v62 = vld [vmem:[#allocation5 + $0x1d4] ss:$8 sps:$4 sm:$0xff]  }
  0x6a   : > { %669 = vmatprep.subr.bf16.mxu1 %v1285_v30  ;;  %v1314_v63 = vld [vmem:[#allocation5 + $0x1d0] ss:$8 sps:$4 sm:$0xff]   ;;  %v1315_v0 = vld [vmem:[#allocation5 + $0x1e4] ss:$8 sps:$4 sm:$0xff]   ;;  %v1317_v1 = vld [vmem:[#allocation5 + $0x1e0] ss:$8 sps:$4 sm:$0xff]  }
  0x6b   : > { %421 = vmatpush1.bf16.msra.mxu0 %v1242_v11  ;;  %v1318_v2 = vld [vmem:[#allocation5 + $0x1f4] ss:$8 sps:$4 sm:$0xff]   ;;  %v1320_v3 = vld [vmem:[#allocation5 + $0x1f0] ss:$8 sps:$4 sm:$0xff]   ;;  %v1321_v4 = vld [vmem:[#allocation5 + $0x200] ss:$8 sps:$4 sm:$0xff]  }
  0x6c   : > { %422 = vmatprep.subr.bf16.mxu0 %v1243_v12  ;;  %v1323_v5 = vld [vmem:[#allocation5 + $0x204] ss:$8 sps:$4 sm:$0xff]   ;;  %v1326_v6 = vld [vmem:[#allocation5 + $0x214] ss:$8 sps:$4 sm:$0xff]   ;;  %v1324_v7 = vld [vmem:[#allocation5 + $0x210] ss:$8 sps:$4 sm:$0xff]  }
  0x6d   : > { %670 = vmatpush1.bf16.msra.mxu1 %v1287_v33  ;;  %v1329_v8 = vld [vmem:[#allocation5 + $0x224] ss:$8 sps:$4 sm:$0xff]   ;;  %v1327_v9 = vld [vmem:[#allocation5 + $0x220] ss:$8 sps:$4 sm:$0xff]   ;;  %v1332_v10 = vld [vmem:[#allocation5 + $0x234] ss:$8 sps:$4 sm:$0xff]  }
  0x6e   : > { %671 = vmatprep.subr.bf16.mxu1 %v1288_v34  ;;  %v1330_v11 = vld [vmem:[#allocation5 + $0x230] ss:$8 sps:$4 sm:$0xff]   ;;  %v1335_v12 = vld [vmem:[#allocation5 + $0x244] ss:$8 sps:$4 sm:$0xff]   ;;  %v1338_v14 = vld [vmem:[#allocation5 + $0x254] ss:$8 sps:$4 sm:$0xff]  }
  0x6f   : > { %423 = vmatpush1.bf16.msra.mxu0 %v1245_v13  ;;  %v1333_v13 = vld [vmem:[#allocation5 + $0x240] ss:$8 sps:$4 sm:$0xff]   ;;  %v1336_v15 = vld [vmem:[#allocation5 + $0x250] ss:$8 sps:$4 sm:$0xff]   ;;  %v1341_v16 = vld [vmem:[#allocation5 + $0x264] ss:$8 sps:$4 sm:$0xff]  }
  0x70   : > { %424 = vmatprep.subr.bf16.mxu0 %v1246_v18  ;;  %v1339_v17 = vld [vmem:[#allocation5 + $0x260] ss:$8 sps:$4 sm:$0xff]   ;;  %v1344_v18 = vld [vmem:[#allocation5 + $0x274] ss:$8 sps:$4 sm:$0xff]   ;;  %v1342_v19 = vld [vmem:[#allocation5 + $0x270] ss:$8 sps:$4 sm:$0xff]  }
  0x71   : > { %672 = vmatpush1.bf16.msra.mxu1 %v1290_v36  ;;  %v1345_v21 = vld [vmem:[#allocation5 + $0x280] ss:$8 sps:$4 sm:$0xff]   ;;  %v1350_v22 = vld [vmem:[#allocation5 + $0x294] ss:$8 sps:$4 sm:$0xff]   ;;  %s970_s10 = sshll.u32 %s201_s9, 4  ;;  %s956_s16 = scalar_lea.sflag [#allocation4], %s1660_s30  ;;  %s1695_s10 = int_to_ptr.vmem [resolvable:$true] %s970_s10 }
  0x72   : > { %673 = vmatprep.subr.bf16.mxu1 %v1291_v38  ;;  %v1351_v25 = vld [vmem:[#allocation5 + $0x2a0] ss:$8 sps:$4 sm:$0xff]   ;;  %v1356_v26 = vld [vmem:[#allocation5 + $0x2b4] ss:$8 sps:$4 sm:$0xff]   ;;  %s1427_s29 = scalar_lea.vmem %s1695_s10, 256  ;;  %s1503_s23 = smov [#allocation7]  }
  0x73   : > { %425 = vmatpush1.bf16.msra.mxu0 %v1248_v20  ;;  %v1347_v20 = vld [vmem:[#allocation5 + $0x284] ss:$8 sps:$4 sm:$0xff]   ;;  %v1357_v29 = vld [vmem:[#allocation5 + $0x2c0] ss:$8 sps:$4 sm:$0xff]   ;;  %v1362_v30 = vld [vmem:[#allocation5 + $0x2d4] ss:$8 sps:$4 sm:$0xff]   ;;  %p1428_p4 = scmp.ne.s32.totalorder %s1695_s10, %s1427_s29 }
  0x74   : > { %426 = vmatprep.subr.bf16.mxu0 %v1249_v23  ;;  %v1348_v23 = vld [vmem:[#allocation5 + $0x290] ss:$8 sps:$4 sm:$0xff]   ;;  %s1431_s22 = sshll.u32 %s1503_s23, 4  ;;  %s1432_s22 = int_to_ptr.vmem [resolvable:$false] %s1431_s22 }
  0x75   : > { %674 = vmatpush1.bf16.msra.mxu1 %v1293_v40  ;;  %p1429_p6 = pnand %p1428_p4, %p1615_p12  ;;  %s1433_s6 = scalar_lea.vmem %s1432_s22, 512 }
  0x76   : > { %675 = vmatprep.subr.bf16.mxu1 %v1294_v42  ;;  %p1434_p10 = scmp.lt.s32.totalorder %s1695_s10, %s1432_s22  ;;  %p1435_p13 = scmp.lt.s32.totalorder %s1433_s6, %s1427_s29 }
  0x77   : > { %427 = vmatpush1.bf16.msra.mxu0 %v1251_v24  ;;  %v1353_v24 = vld [vmem:[#allocation5 + $0x2a4] ss:$8 sps:$4 sm:$0xff]   ;;  %p1430_p8 = pneg %p1429_p6 }
  0x78   : > { %428 = vmatprep.subr.bf16.mxu0 %v1252_v27  ;;  %v1354_v27 = vld [vmem:[#allocation5 + $0x2b0] ss:$8 sps:$4 sm:$0xff]   ;;  %p1436_p3 = por %p1435_p13, %p1434_p10 }
  0x79   : > { %676 = vmatpush1.bf16.msra.mxu1 %v1296_v44 }
  0x7a   : > { %677 = vmatprep.subr.bf16.mxu1 %v1297_v46  ;;  %p1437_p7 = pnand %p1436_p3, %p1430_p8 }
  0x7b   : > { %429 = vmatpush1.bf16.msra.mxu0 %v1254_v28  ;;  %v1359_v28 = vld [vmem:[#allocation5 + $0x2c4] ss:$8 sps:$4 sm:$0xff]  }
  0x7c   : > { %430 = vmatprep.subr.bf16.mxu0 %v1255_v31  ;;  %v1360_v31 = vld [vmem:[#allocation5 + $0x2d0] ss:$8 sps:$4 sm:$0xff]  }
  0x7d   : > { %678 = vmatpush1.bf16.msra.mxu1 %v1299_v48 }
  0x7e   : > { %679 = vmatprep.subr.bf16.mxu1 %v1300_v50  ;;  %v1363_v50 = vld [vmem:[#allocation5 + $0x2e0] ss:$8 sps:$4 sm:$0xff]  }
  0x7f   : > { %431 = vmatpush1.bf16.msra.mxu0 %v1257_v32  ;;  %v240_v32 = vlaneseq }
  0x80   : > { %432 = vmatprep.subr.bf16.mxu0 %v1258_v35  ;;  %v236_v35 = vld [vmem:[%s1739_s2] sm:$0x3] }
  0x81   : > { %680 = vmatpush1.bf16.msra.mxu1 %v1302_v52  ;;  %v241_v33 = vshrl.u32 %v240_v32, 7  ;;  %v1366_v52 = vld [vmem:[#allocation5 + $0x2f0] ss:$8 sps:$4 sm:$0xff]  }
  0x82   : > { %681 = vmatprep.subr.bf16.mxu1 %v1303_v55 }
  0x83   : > { %433 = vmatpush1.bf16.msra.mxu0 %v1260_v37  ;;  %v242_v34 = vsub.s32 0, %v241_v33  ;;  %v246_v36 = vsub.s32 1, %v241_v33 }
  0x84   : > { %434 = vmatprep.subr.bf16.mxu0 %v1261_v39 }
  0x85   : > { %682 = vmatpush1.bf16.msra.mxu1 %v1305_v57  ;;  %v243_v37 = vrot.slane %v236_v35, %v242_v34  ;;  %v247_v38 = vrot.slane %v236_v35, %v246_v36 }
  0x86   : > { %683 = vmatprep.subr.bf16.mxu1 %v1306_v58 }
  0x87   : > { %435 = vmatpush1.bf16.msra.mxu0 %v1263_v41 }
  0x88   : > { %436 = vmatprep.subr.bf16.mxu0 %v1264_v43 }
  0x89   : > { %684 = vmatpush1.bf16.msra.mxu1 %v1308_v59 }
  0x8a   : > { %685 = vmatprep.subr.bf16.mxu1 %v1309_v60 }
  0x8b   : > { %437 = vmatpush1.bf16.msra.mxu0 %v1266_v45 }
  0x8c   : > { %438 = vmatprep.subr.bf16.mxu0 %v1267_v47 }
  0x8d   : > { %686 = vmatpush1.bf16.msra.mxu1 %v1311_v61 }
  0x8e   : > { %687 = vmatprep.subr.bf16.mxu1 %v1312_v62 }
  0x8f   : > { %439 = vmatpush1.bf16.msra.mxu0 %v1269_v49  ;;  %v1365_v49 = vld [vmem:[#allocation5 + $0x2e4] ss:$8 sps:$4 sm:$0xff]  }
  0x90   : > { %440 = vmatprep.subr.bf16.mxu0 %v1270_v51  ;;  %v1368_v51 = vld [vmem:[#allocation5 + $0x2f4] ss:$8 sps:$4 sm:$0xff]  }
  0x91   : > { %688 = vmatpush1.bf16.msra.mxu1 %v1314_v63 }
  0x92   : > { %689 = vmatprep.subr.bf16.mxu1 %v1315_v0 }
  0x93   : > { %441 = vmatpush1.bf16.msra.mxu0 %v1272_v53  ;;  %v1093_v53 = vld [vmem:[%s1739_s2 + $0x2] sm:$0x3] }
  0x94   : > { %912 = vmatprep.subr.bf16.mxu0 %v1323_v5  ;;  %v494_v54 = vrot.slane %v1093_v53, %v242_v34  ;;  %v498_v55 = vrot.slane %v1093_v53, %v246_v36 }
  0x95   : > { %690 = vmatpush1.bf16.msra.mxu1 %v1317_v1 }
  0x96   : > { %443 = vmatmul.mubr.bf16.vlgmr.msra.gmra.mrb[0].mxu0 %v237_v56  ;;  %691 = vmatprep.subr.bf16.mxu1 %v1318_v2  ;;  %v1126_v2 = vld [vmem:[%s1739_s2 + $0x4] sm:$0x3] }
  0x97   : > { %913 = vmatpush1.bf16.msra.mxu0 %v1321_v4  ;;  %v749_v4 = vrot.slane %v1126_v2, %v246_v36 }
  0x98   : > { %914 = vmatprep.subr.bf16.mxu0 %v1326_v6 }
  0x99   : > { %692 = vmatpush1.bf16.msra.mxu1 %v1320_v3  ;;  %v745_v3 = vrot.slane %v1126_v2, %v242_v34 }
  0x9b   : > { %915 = vmatpush1.bf16.msra.mxu0 %v1324_v7 }
  0x9c   : > { %916 = vmatprep.subr.bf16.mxu0 %v1329_v8 }
  0x9f   : > { %917 = vmatpush1.bf16.msra.mxu0 %v1327_v9 }
  0xa0   : > { %918 = vmatprep.subr.bf16.mxu0 %v1332_v10 }
  0xa3   : > { %919 = vmatpush1.bf16.msra.mxu0 %v1330_v11 }
  0xa4   : > { %920 = vmatprep.subr.bf16.mxu0 %v1335_v12 }
  0xa7   : > { %921 = vmatpush1.bf16.msra.mxu0 %v1333_v13 }
  0xa8   : > { %922 = vmatprep.subr.bf16.mxu0 %v1338_v14 }
  0xab   : > { %923 = vmatpush1.bf16.msra.mxu0 %v1336_v15 }
  0xac   : > { %924 = vmatprep.subr.bf16.mxu0 %v1341_v16 }
  0xaf   : > { %925 = vmatpush1.bf16.msra.mxu0 %v1339_v17 }
  0xb0   : > { %926 = vmatprep.subr.bf16.mxu0 %v1344_v18 }
  0xb3   : > { %927 = vmatpush1.bf16.msra.mxu0 %v1342_v19 }
  0xb4   : > { %928 = vmatprep.subr.bf16.mxu0 %v1347_v20 }
  0xb7   : > { %929 = vmatpush1.bf16.msra.mxu0 %v1345_v21 }
  0xb8   : > { %930 = vmatprep.subr.bf16.mxu0 %v1350_v22 }
  0xbb   : > { %931 = vmatpush1.bf16.msra.mxu0 %v1348_v23 }
  0xbc   : > { %932 = vmatprep.subr.bf16.mxu0 %v1353_v24 }
  0xbf   : > { %933 = vmatpush1.bf16.msra.mxu0 %v1351_v25 }
  0xc0   : > { %934 = vmatprep.subr.bf16.mxu0 %v1356_v26 }
  0xc3   : > { %935 = vmatpush1.bf16.msra.mxu0 %v1354_v27 }
  0xc4   : > { %936 = vmatprep.subr.bf16.mxu0 %v1359_v28 }
  0xc7   : > { %937 = vmatpush1.bf16.msra.mxu0 %v1357_v29 }
  0xc8   : > { %938 = vmatprep.subr.bf16.mxu0 %v1362_v30 }
  0xcb   : > { %939 = vmatpush1.bf16.msra.mxu0 %v1360_v31 }
  0xcc   : > { %940 = vmatprep.subr.bf16.mxu0 %v1365_v49 }
  0xcf   : > { %941 = vmatpush1.bf16.msra.mxu0 %v1363_v50 }
  0xd0   : > { %942 = vmatprep.subr.bf16.mxu0 %v1368_v51 }
  0xd3   : > { %943 = vmatpush1.bf16.msra.mxu0 %v1366_v52 }
 0x169   : > { %v444_v39 = vpop.f32.mrb[0].mxu0 }
 0x16a   : > { %v445_v40 = vadd.f32 %v444_v39, %v243_v37  ;;  %v446_v41 = vpop.f32.mrb[1].mxu0 }
 0x16b   : > { %v447_v42 = vadd.f32 %v446_v41, %v247_v38  ;;  %v448_v43 = vpop.f32.mrb[2].mxu0 }
 0x16c   : > { %v451_v44 = vmax.f32 %v445_v40, 0.0  ;;  %v449_v45 = vpop.f32.mrb[3].mxu0 }
 0x16d   : > { %v452_v46 = vmax.f32 %v447_v42, 0.0 }
 0x16e   : > { %v488_v48 = vpack.c.bf16 %v451_v44, %v451_v44 }
 0x16f   : > { %v489_v47 = vpack.c.bf16 %v452_v46, %v452_v46 }
 0x171   : > { %693 = vmatprep.mubr.bf16.mxu1 %v489_v47 }
 0x172   : > { %694 = vmatmul.mubr.bf16.vlgmr.msra.gmra.mrb[0].mxu1 %v488_v48 }
 0x245   : > { %v695_v56 = vpop.f32.mrb[0].mxu1 }
 0x246   : > { %v696_v57 = vadd.f32 %v695_v56, %v494_v54  ;;  %v697_v58 = vpop.f32.mrb[1].mxu1 }
 0x247   : > { %v698_v59 = vadd.f32 %v697_v58, %v498_v55  ;;  %v699_v60 = vpop.f32.mrb[2].mxu1 }
 0x248   : > { %v702_v61 = vmax.f32 %v696_v57, 0.0  ;;  %v700_v62 = vpop.f32.mrb[3].mxu1 }
 0x249   : > { %v703_v63 = vmax.f32 %v698_v59, 0.0 }
 0x24a   : > { %v739_v1 = vpack.c.bf16 %v702_v61, %v702_v61 }
 0x24b   : > { %v740_v0 = vpack.c.bf16 %v703_v63, %v703_v63 }
 0x24d   : > { %944 = vmatprep.mubr.bf16.mxu0 %v740_v0 }
 0x24e   : > { %945 = vmatmul.mubr.bf16.vlgmr.msra.gmra.mrb[4].mxu0 %v739_v1 }
 0x321   : > { %v946_v5 = vpop.f32.mrb[4].mxu0 }
 0x322   : > { %v947_v6 = vadd.f32 %v946_v5, %v745_v3  ;;  %v948_v7 = vpop.f32.mrb[5].mxu0 }
 0x323   : > { %v949_v8 = vadd.f32 %v948_v7, %v749_v4  ;;  %v950_v9 = vpop.f32.mrb[6].mxu0 }
 0x324   : > { %953 = vst [vmem:[%s201_s9] sm:$0xff] %v947_v6  ;;  %v951_v10 = vpop.f32.mrb[7].mxu0 }
 0x325   : > { %954 = vst [vmem:[%s201_s9 + $0x8] sm:$0xff] %v949_v8 }
 0x326   : > { %1440 = shalt.err (!%p1437_p7)
}
 0x327   : > { %s1441_s30 = scalar_lea.hbm %s1693_s28, 256  ;;  %s1445_s20 = scalar_lea.hbm %s1740_s3, 512 }
 0x328   : > { %p1442_p9 = scmp.ne.s32.totalorder %s1693_s28, %s1441_s30  ;;  %p1446_p0 = scmp.lt.u32.totalorder %s1693_s28, %s1740_s3 }
 0x329   : > { %p1447_p11 = scmp.lt.u32.totalorder %s1445_s20, %s1441_s30  ;;  %p1449_p4 = scmp.lt.u32.totalorder %s1441_s30, %s1693_s28 }
 0x32a   : > { %p1443_p2 = pnand %p1442_p9, %p1615_p12 }
 0x32b   : > { %p1448_p1 = por %p1447_p11, %p1446_p0 }
 0x32c   : > { %p1444_p5 = pneg %p1443_p2 }
 0x32d   : > { %p1450_p6 = por %p1449_p4, %p1448_p1 }
 0x32f   : > { %p1451_p8 = pnand %p1450_p6, %p1444_p5 }
 0x331   : > { %1454 = shalt.err (!%p1451_p8)
}
 0x332   : > { %1172 = dma.vmem_to_hbm [thread:$0]  (%p1615_p12), %s1695_s10, 256, %s1693_s28, %s956_s16  }
 0x333 PF: > { %s982_s26 = sand.u32 1, %s1485_s12   ;;  %p1755_p10 = scmp.ne.s32.totalorder %s1745_s19, 0 }
 0x334   : > { %p1756_p13 = scmp.ge.s32.totalorder %s1497_s15, 2  ;;  %s983_s5 = scalar_lea.sflag [#allocation4], %s982_s26 }
 0x336   : > { %p1183_p3 = pnand %p1756_p13, %p1755_p10 }
 0x338   : > { %1480 = dma.done.wait (!%p1183_p3), %s983_s5, 256  }
 0x339   : > { %1482 = vsyncadd (!%p1183_p3), %s983_s5, 4294967040  ;;  %p17_p7 = scmp.ge.s32.totalorder %s1580_s24, 4   ;;  %s1757_s12 = smov %s1489_s13 }
 0x33a   : > { %s1758_s13 = smov %s1493_s14  ;;  %s1759_s14 = smov %s1611_s17 }
 0x33b   : > { %s1760_s15 = smov %s1580_s24  ;;  %19 = sbr.rel (!%p17_p7) target bundleno = 6 (0x6), region = 85 }
 0x342   :  { %988 = vsyncpa [#allocation3], 1 }
 0x343   :  { %990 = vsyncpa [#allocation3 + $0x1], 1 }
 0x344   :  { %991 = vsyncpa [#allocation6], 1 }
 0x345   :  { %992 = vsyncpa [#allocation4], 1 }
 0x346   :  { %994 = vsyncpa [#allocation4 + $0x1], 1 }

</bundles_post_ra>
